<compile_context>
chip_gen: v7x
topology: tpu7x:2x2x1
jax: 0.10.0
libtpu: 0.0.40
codegen_flags: <defaults>
</compile_context>

<pallas_src>
import jax
import jax.numpy as jnp
from jax.experimental import pallas as pl
from jax.experimental.pallas import tpu as pltpu


# ----------------------------------------------------------------------------
# small helpers
# ----------------------------------------------------------------------------
def _round_up(x, m):
    return ((x + m - 1) // m) * m


def _pad_axis_to(a, axis, size):
    pad = size - a.shape[axis]
    if pad <= 0:
        return a
    widths = [(0, 0)] * a.ndim
    widths[axis] = (0, pad)
    return jnp.pad(a, widths)


def _vmem_capacity_bytes():
    try:
        return int(pltpu.get_tpu_info().vmem_capacity_bytes)
    except Exception:
        return 64 * 1024 * 1024   # conservative fallback (v7x-sized)


def _single_buffered_spec(shape, index_map):
    # Weight / bias blocks change only with the outermost grid axis; single
    # buffering halves their VMEM footprint (matters most on v7x's 64 MiB).
    try:
        return pl.BlockSpec(shape, index_map, pipeline_mode=pl.Buffered(1))
    except (TypeError, AttributeError):
        return pl.BlockSpec(shape, index_map)


# ----------------------------------------------------------------------------
# kernels
# ----------------------------------------------------------------------------
def _conv1x1_body(x_ref, w_ref, b_ref, m_ref, o_ref):
    # x_ref: (nb, C_in, tT)   w_ref: (tCo, C_in)   b_ref: (tCo, 1) f32
    # m_ref: (nb, 1|tCo, tT) or None               o_ref: (nb, tCo, tT)
    w = w_ref[...]
    nb, t_co, t_t = o_ref.shape
    # Hoisted: a single bias broadcast reused by every batch element.
    bias = jnp.broadcast_to(b_ref[...], (t_co, t_t))
    for i in range(nb):                                   # nb is static & small
        y = jnp.dot(w, x_ref[i], preferred_element_type=jnp.float32)   # MXU
        y = y + bias
        if m_ref is not None:
            y = y * m_ref[i]                              # (1|tCo, tT) broadcast
        o_ref[i] = y.astype(o_ref.dtype)


def _conv1x1_kernel(x_ref, w_ref, b_ref, o_ref):
    _conv1x1_body(x_ref, w_ref, b_ref, None, o_ref)


def _conv1x1_mask_kernel(x_ref, w_ref, b_ref, m_ref, o_ref):
    _conv1x1_body(x_ref, w_ref, b_ref, m_ref, o_ref)


# ----------------------------------------------------------------------------
# tile selection (generation-aware)
# ----------------------------------------------------------------------------
def _select_tiles(N, C_in, C_out, T, xb, ob, vmem_cap):
    big_vmem = vmem_cap > 96 * 2**20            # v5e/v6e (128 MiB) vs v7x (64 MiB)
    t_tile_max = 2048 if big_vmem else 1024     # prefer one big lane-dense matmul
    co_tile_max = 1024
    nb_cap = 32
    x_step_budget = (8 if big_vmem else 4) * 2**20   # per-step x-buffer budget
    live_budget = (3 * vmem_cap) // 8                # ~48 MiB v5e/v6e, ~24 MiB v7x

    # Time tile first: lane-dense multiple of 128, balanced across tiles.
    t128 = _round_up(T, 128)
    n_t = max(1, -(-t128 // t_tile_max))
    tT = _round_up(-(-t128 // n_t), 128)

    # C_out tile: multiple of 8, balanced across tiles.
    co8 = _round_up(C_out, 8)
    n_co = max(1, -(-co8 // co_tile_max))
    tCo = _round_up(-(-co8 // n_co), 8)

    # Batch block: only grow when a single time tile covers all of T.
    if n_t == 1:
        nb = max(1, min(N, nb_cap, x_step_budget // max(1, C_in * tT * xb)))
    else:
        nb = 1

    def live_bytes(nb_, tCo_, tT_):
        ci_s = _round_up(C_in, 8)          # sublane padding of the x block
        ci_l = _round_up(C_in, 128)        # lane padding of the W block
        x_b = 2 * nb_ * ci_s * tT_ * xb    # double-buffered input
        o_b = 2 * nb_ * tCo_ * tT_ * ob    # double-buffered output
        w_b = 2 * tCo_ * ci_l * xb         # conservative (2 bufs even if Buffered(1))
        b_b = 2 * tCo_ * 128 * 4           # bias lane-padded to 128
        m_b = 2 * nb_ * 8 * tT_ * 4        # optional fused-mask block
        return x_b + o_b + w_b + b_b + m_b

    # Shrink whichever dimension contributes most until we fit the budget.
    while live_bytes(nb, tCo, tT) > live_budget:
        x_o = 2 * nb * _round_up(C_in, 8) * tT * xb + 2 * nb * tCo * tT * ob
        w_o = 2 * tCo * _round_up(C_in, 128) * xb + 2 * nb * tCo * tT * ob
        cands = []
        if nb > 1:
            cands.append(("nb", x_o))
        if tT > 128:
            cands.append(("tT", x_o))
        if tCo > 8:
            cands.append(("tCo", w_o))
        if not cands:
            break
        which = max(cands, key=lambda c: c[1])[0]
        if which == "nb":
            nb = max(1, nb // 2)
        elif which == "tT":
            tT = max(128, _round_up(tT // 2, 128))
        else:
            tCo = max(8, _round_up(tCo // 2, 8))

    # Guarantee >= 2 grid steps on a parallel axis (2 TensorCores on v7x).
    steps = (-(-co8 // tCo)) * (-(-N // nb)) * (-(-t128 // tT))
    if steps < 2:
        if nb > 1:
            nb = -(-nb // 2)
        elif tT > 128 and t128 >= 256:
            tT = max(128, _round_up(tT // 2, 128))
        # else: problem too small to split; a single step is fine.

    return nb, tCo, tT, live_bytes(nb, tCo, tT)


# ----------------------------------------------------------------------------
# wrapper (forward of Conv1DK1Block)
# ----------------------------------------------------------------------------
def conv1d_k1_block(x, weight, bias, x_mask=None):
    """Forward of Conv1DK1Block (ops_seq=('conv',), kernel_size=1, bias=True).

    x:      (N, C_in, T)       NCT layout, matching torch.nn.Conv1d
    weight: (C_out, C_in, 1)   torch Conv1d weight (kernel dim squeezed here)
    bias:   (C_out,)
    x_mask: optional mask broadcastable against the (N, C_out, T) output;
            applied after the conv (module semantics), fused into the kernel.
    """
    N, C_in, T = x.shape
    C_out = weight.shape[0]

    out_dtype = x.dtype
    xb = jnp.dtype(x.dtype).itemsize
    ob = jnp.dtype(out_dtype).itemsize

    w2d = weight.reshape(C_out, C_in).astype(x.dtype)   # keep bf16 inputs bf16
    b2d = bias.reshape(C_out, 1).astype(jnp.float32)    # f32 epilogue

    vmem_cap = _vmem_capacity_bytes()
    nb, tCo, tT, live_est = _select_tiles(N, C_in, C_out, T, xb, ob, vmem_cap)

    Np = _round_up(N, nb)
    Cop = _round_up(C_out, tCo)
    Tp = _round_up(_round_up(T, 128), tT)

    xp = _pad_axis_to(_pad_axis_to(x, 2, Tp), 0, Np)
    wp = _pad_axis_to(w2d, 0, Cop)
    bp = _pad_axis_to(b2d, 0, Cop)

    grid = (Cop // tCo, Np // nb, Tp // tT)   # C_out outermost -> W fetched once/tile

    in_specs = [
        pl.BlockSpec((nb, C_in, tT), lambda co, n, t: (n, 0, t)),
        _single_buffered_spec((tCo, C_in), lambda co, n, t: (co, 0)),
        _single_buffered_spec((tCo, 1), lambda co, n, t: (co, 0)),
    ]
    args = [xp, wp, bp]
    kernel = _conv1x1_kernel

    if x_mask is not None:
        m = jnp.asarray(x_mask).astype(jnp.float32)
        m = m.reshape((1,) * (3 - m.ndim) + m.shape)          # right-align dims
        if m.shape[1] == 1:                                    # time/batch mask
            m = jnp.broadcast_to(m, (N, 1, T))
            mp = _pad_axis_to(_pad_axis_to(m, 2, Tp), 0, Np)
            in_specs.append(pl.BlockSpec((nb, 1, tT), lambda co, n, t: (n, 0, t)))
        else:                                                  # channel-dependent
            m = jnp.broadcast_to(m, (N, C_out, T))
            mp = _pad_axis_to(_pad_axis_to(_pad_axis_to(m, 2, Tp), 1, Cop), 0, Np)
            in_specs.append(pl.BlockSpec((nb, tCo, tT), lambda co, n, t: (n, co, t)))
        args.append(mp)
        kernel = _conv1x1_mask_kernel

    gen_cap = (7 * vmem_cap) // 8             # ~56 MiB on v7x, ~112 MiB on v5e/v6e
    vmem_limit = int(min(gen_cap,
                         max(16 * 2**20, live_est + live_est // 4 + (2 << 20))))

    def _call(single_buffer_wb):
        specs = list(in_specs)
        if not single_buffer_wb:
            specs[1] = pl.BlockSpec((tCo, C_in), lambda co, n, t: (co, 0))
            specs[2] = pl.BlockSpec((tCo, 1), lambda co, n, t: (co, 0))
        return pl.pallas_call(
            kernel,
            out_shape=jax.ShapeDtypeStruct((Np, Cop, Tp), out_dtype),
            grid_spec=pl.GridSpec(
                grid=grid,
                in_specs=specs,
                out_specs=pl.BlockSpec((nb, tCo, tT), lambda co, n, t: (n, co, t)),
            ),
            compiler_params=pltpu.CompilerParams(
                dimension_semantics=("parallel", "parallel", "parallel"),
                vmem_limit_bytes=vmem_limit,
            ),
        )(*args)

    try:
        out_p = _call(True)
    except Exception:   # pl.Buffered(1) unsupported on this version -> default buffering
        out_p = _call(False)

    return out_p[:N, :C_out, :T]


# ----------------------------------------------------------------------------
# self-test
# ----------------------------------------------------------------------------
if __name__ == "__main__":
    key = jax.random.PRNGKey(0)
    kx, kw, kb, km = jax.random.split(key, 4)

    # Small shapes consistent with the module: batch=2, n_in=4, n_out=8, T=16.
    N, C_IN, C_OUT, T = 2, 4, 8, 16
    x = jax.random.normal(kx, (N, C_IN, T), dtype=jnp.float32)
    weight = jax.random.normal(kw, (C_OUT, C_IN, 1), dtype=jnp.float32) * 0.1
    bias = jax.random.normal(kb, (C_OUT,), dtype=jnp.float32) * 0.1

    y = jax.block_until_ready(conv1d_k1_block(x, weight, bias))
    y_ref = jnp.einsum("oc,nct->not", weight[:, :, 0], x) + bias[None, :, None]
    assert y.shape == (N, C_OUT, T)
    assert jnp.allclose(y, y_ref, atol=1e-5, rtol=1e-5)

    # Ragged shapes + fused time mask (exercises padding on N / C_out / T).
    N2, C_IN2, C_OUT2, T2 = 3, 6, 20, 200
    x2 = jax.random.normal(kx, (N2, C_IN2, T2), dtype=jnp.float32)
    w2 = jax.random.normal(kw, (C_OUT2, C_IN2, 1), dtype=jnp.float32) * 0.1
    b2 = jax.random.normal(kb, (C_OUT2,), dtype=jnp.float32) * 0.1
    mask2 = (jax.random.uniform(km, (N2, 1, T2)) > 0.3).astype(jnp.float32)
    y2 = jax.block_until_ready(conv1d_k1_block(x2, w2, b2, x_mask=mask2))
    y2_ref = (jnp.einsum("oc,nct->not", w2[:, :, 0], x2) + b2[None, :, None]) * mask2
    assert y2.shape == (N2, C_OUT2, T2)
    assert jnp.allclose(y2, y2_ref, atol=1e-5, rtol=1e-5)

    # Long sequence (exercises the multi-time-tile / padded-T path).
    T3 = 2100
    x3 = jax.random.normal(kx, (N, C_IN, T3), dtype=jnp.float32)
    y3 = jax.block_until_ready(conv1d_k1_block(x3, weight, bias))
    y3_ref = jnp.einsum("oc,nct->not", weight[:, :, 0], x3) + bias[None, :, None]
    assert y3.shape == (N, C_OUT, T3)
    assert jnp.allclose(y3, y3_ref, atol=1e-5, rtol=1e-5)

    print("KERNEL_OK")
</pallas_src>

<mosaic_0001>
module attributes {stable_mosaic.version = 11 : i64} {
  func.func @_conv1x1_kernel(%arg0: i32, %arg1: i32, %arg2: i32, %arg3: memref<1x4x128xf32, #tpu.memory_space<vmem>>, %arg4: memref<8x4xf32, #tpu.memory_space<vmem>>, %arg5: memref<8x1xf32, #tpu.memory_space<vmem>>, %arg6: memref<1x8x128xf32, #tpu.memory_space<vmem>>) attributes {dimension_semantics = [#tpu.dimension_semantics<parallel>, #tpu.dimension_semantics<parallel>, #tpu.dimension_semantics<parallel>], iteration_bounds = array<i64: 1, 2, 1>, scalar_prefetch = 0 : i64, scratch_operands = 0 : i64, tpu.core_type = #tpu.core_type<tc>, window_params = [{transform_indices = @transform_0, window_bounds = array<i64: 1, 4, 128>}, {pipeline_mode = #tpu.pipeline_mode<synchronous>, transform_indices = @transform_1, window_bounds = array<i64: 8, 4>}, {pipeline_mode = #tpu.pipeline_mode<synchronous>, transform_indices = @transform_2, window_bounds = array<i64: 8, 1>}, {transform_indices = @transform_3, window_bounds = array<i64: 1, 8, 128>}]} {
    %c0 = arith.constant 0 : index
    %c0_0 = arith.constant 0 : index
    %0 = vector.load %arg4[%c0, %c0_0] : memref<8x4xf32, #tpu.memory_space<vmem>>, vector<8x4xf32>
    %c0_1 = arith.constant 0 : index
    %c0_2 = arith.constant 0 : index
    %1 = vector.load %arg5[%c0_1, %c0_2] : memref<8x1xf32, #tpu.memory_space<vmem>>, vector<8x1xf32>
    %2 = vector.shape_cast %1 : vector<8x1xf32> to vector<8x1xf32>
    %3 = vector.broadcast %2 : vector<8x1xf32> to vector<8x128xf32>
    %c0_3 = arith.constant 0 : index
    %c0_4 = arith.constant 0 : index
    %c0_5 = arith.constant 0 : index
    %4 = vector.load %arg3[%c0_3, %c0_4, %c0_5] : memref<1x4x128xf32, #tpu.memory_space<vmem>>, vector<1x4x128xf32>
    %5 = vector.shape_cast %4 : vector<1x4x128xf32> to vector<4x128xf32>
    %cst = arith.constant dense<0.000000e+00> : vector<8x128xf32>
    %6 = tpu.matmul %0, %5, %cst {dimension_numbers = #tpu.dot_dimension_numbers<[1], [0], [0], [1], [0, 0, 1, 1], [], []>} : vector<8x4xf32>, vector<4x128xf32>, vector<8x128xf32> -> vector<8x128xf32>
    %7 = arith.addf %6, %3 : vector<8x128xf32>
    %c0_6 = arith.constant 0 : index
    %c0_7 = arith.constant 0 : index
    %c0_8 = arith.constant 0 : index
    %8 = vector.load %arg6[%c0_6, %c0_7, %c0_8] : memref<1x8x128xf32, #tpu.memory_space<vmem>>, vector<1x8x128xf32>
    %9 = vector.shape_cast %8 : vector<1x8x128xf32> to vector<8x128xf32>
    %10 = vector.shape_cast %7 : vector<8x128xf32> to vector<1x8x128xf32>
    tpu.vector_store %arg6[%c0_6, %c0_7, %c0_8], %10 {strides = array<i32>} : memref<1x8x128xf32, #tpu.memory_space<vmem>>, vector<1x8x128xf32>,
    return
  }
  func.func @transform_0(%arg0: i32, %arg1: i32, %arg2: i32) -> (i32, i32, i32) {
    %c0_i32 = arith.constant 0 : i32
    %c0_i32_0 = arith.constant 0 : i32
    return %arg1, %c0_i32, %arg2 : i32, i32, i32
  }
  func.func @transform_1(%arg0: i32, %arg1: i32, %arg2: i32) -> (i32, i32) {
    %c0_i32 = arith.constant 0 : i32
    %c0_i32_0 = arith.constant 0 : i32
    return %arg0, %c0_i32 : i32, i32
  }
  func.func @transform_2(%arg0: i32, %arg1: i32, %arg2: i32) -> (i32, i32) {
    %c0_i32 = arith.constant 0 : i32
    %c0_i32_0 = arith.constant 0 : i32
    return %arg0, %c0_i32 : i32, i32
  }
  func.func @transform_3(%arg0: i32, %arg1: i32, %arg2: i32) -> (i32, i32, i32) {
    %c0_i32 = arith.constant 0 : i32
    return %arg1, %arg0, %arg2 : i32, i32, i32
  }
}

module attributes {stable_mosaic.version = 11 : i64} {
  func.func @_conv1x1_kernel(%arg0: i32, %arg1: i32, %arg2: i32, %arg3: memref<1x4x128xf32, #tpu.memory_space<vmem>>, %arg4: memref<8x4xf32, #tpu.memory_space<vmem>>, %arg5: memref<8x1xf32, #tpu.memory_space<vmem>>, %arg6: memref<1x8x128xf32, #tpu.memory_space<vmem>>) attributes {dimension_semantics = [#tpu.dimension_semantics<parallel>, #tpu.dimension_semantics<parallel>, #tpu.dimension_semantics<parallel>], iteration_bounds = array<i64: 1, 2, 1>, scalar_prefetch = 0 : i64, scratch_operands = 0 : i64, tpu.core_type = #tpu.core_type<tc>, window_params = [{transform_indices = @transform_0, window_bounds = array<i64: 1, 4, 128>}, {transform_indices = @transform_1, window_bounds = array<i64: 8, 4>}, {transform_indices = @transform_2, window_bounds = array<i64: 8, 1>}, {transform_indices = @transform_3, window_bounds = array<i64: 1, 8, 128>}]} {
    %c0 = arith.constant 0 : index
    %c0_0 = arith.constant 0 : index
    %0 = vector.load %arg4[%c0, %c0_0] : memref<8x4xf32, #tpu.memory_space<vmem>>, vector<8x4xf32>
    %c0_1 = arith.constant 0 : index
    %c0_2 = arith.constant 0 : index
    %1 = vector.load %arg5[%c0_1, %c0_2] : memref<8x1xf32, #tpu.memory_space<vmem>>, vector<8x1xf32>
    %2 = vector.shape_cast %1 : vector<8x1xf32> to vector<8x1xf32>
    %3 = vector.broadcast %2 : vector<8x1xf32> to vector<8x128xf32>
    %c0_3 = arith.constant 0 : index
    %c0_4 = arith.constant 0 : index
    %c0_5 = arith.constant 0 : index
    %4 = vector.load %arg3[%c0_3, %c0_4, %c0_5] : memref<1x4x128xf32, #tpu.memory_space<vmem>>, vector<1x4x128xf32>
    %5 = vector.shape_cast %4 : vector<1x4x128xf32> to vector<4x128xf32>
    %cst = arith.constant dense<0.000000e+00> : vector<8x128xf32>
    %6 = tpu.matmul %0, %5, %cst {dimension_numbers = #tpu.dot_dimension_numbers<[1], [0], [0], [1], [0, 0, 1, 1], [], []>} : vector<8x4xf32>, vector<4x128xf32>, vector<8x128xf32> -> vector<8x128xf32>
    %7 = arith.addf %6, %3 : vector<8x128xf32>
    %c0_6 = arith.constant 0 : index
    %c0_7 = arith.constant 0 : index
    %c0_8 = arith.constant 0 : index
    %8 = vector.load %arg6[%c0_6, %c0_7, %c0_8] : memref<1x8x128xf32, #tpu.memory_space<vmem>>, vector<1x8x128xf32>
    %9 = vector.shape_cast %8 : vector<1x8x128xf32> to vector<8x128xf32>
    %10 = vector.shape_cast %7 : vector<8x128xf32> to vector<1x8x128xf32>
    tpu.vector_store %arg6[%c0_6, %c0_7, %c0_8], %10 {strides = array<i32>} : memref<1x8x128xf32, #tpu.memory_space<vmem>>, vector<1x8x128xf32>,
    return
  }
  func.func @transform_0(%arg0: i32, %arg1: i32, %arg2: i32) -> (i32, i32, i32) {
    %c0_i32 = arith.constant 0 : i32
    %c0_i32_0 = arith.constant 0 : i32
    return %arg1, %c0_i32, %arg2 : i32, i32, i32
  }
  func.func @transform_1(%arg0: i32, %arg1: i32, %arg2: i32) -> (i32, i32) {
    %c0_i32 = arith.constant 0 : i32
    %c0_i32_0 = arith.constant 0 : i32
    return %arg0, %c0_i32 : i32, i32
  }
  func.func @transform_2(%arg0: i32, %arg1: i32, %arg2: i32) -> (i32, i32) {
    %c0_i32 = arith.constant 0 : i32
    %c0_i32_0 = arith.constant 0 : i32
    return %arg0, %c0_i32 : i32, i32
  }
  func.func @transform_3(%arg0: i32, %arg1: i32, %arg2: i32) -> (i32, i32, i32) {
    %c0_i32 = arith.constant 0 : i32
    return %arg1, %arg0, %arg2 : i32, i32, i32
  }
}

</mosaic_0001>

<bundles_post_ra>
// kernel: tpu_custom_call.1
= control target key start
LH: loop header
LB: loop body
LE: loop exit
PB: predicated region body
PF: predicated region fallthrough
CT: control target
= control target key end

     0   :  { %8 = vsyncpa [#allocation3], 0  ;;  %s745_s0 = inlined_call_operand.vmem [shape: f32[2,4,128], index: 0, kind: input, shape index: {}]   ;;  %s746_s1 = inlined_call_operand.vmem [shape: f32[8,4], index: 1, kind: input, shape index: {}]   ;;  %s747_s2 = inlined_call_operand.vmem [shape: f32[8,1], index: 2, kind: input, shape index: {}]   ;;  %s748_s3 = inlined_call_operand.hbm [shape: f32[2,8,128], index: 3, kind: output, shape index: {}]  }
   0x1   :  { %10 = vsyncpa [#allocation3 + $0x1], 0  ;;  %s627_s12 = smov 0   ;;  %s629_s13 = smov 0  }
   0x2   :  { %s631_s14 = smov 0   ;;  %s633_s15 = smov 0  }
   0x3   :  { %s635_s16 = smov 0   ;;  %s637_s17 = smov 0  }
   0x4 LB: > { %s442_s18 = sadd.s32 4294967295, %s601_s17   ;;  %s443_s19 = sadd.s32 4294967294, %s601_s17   ;;  %s601_s17 = sphi %s637_s17, %s16_s17   ;;  %s597_s16 = sphi %s635_s16, %s755_s16   ;;  %s593_s15 = sphi %s633_s15, %s754_s15   ;;  %s589_s14 = sphi %s631_s14, %s753_s14   ;;  %s585_s13 = sphi %s629_s13, %s752_s13   ;;  %s581_s12 = sphi %s627_s12, %s751_s12  }
   0x5   : > { %s31_s20 = sadd.s32 1, %s597_s16  ;;  %s126_s21 = sadd.s32 1, %s589_s14 }
   0x6   : > { %p33_p0 = scmp.ge.s32.totalorder %s31_s20, 2  ;;  %p136_p1 = scmp.ne.s32.totalorder %s589_s14, %s585_s13 }
   0x7   : > { %p137_p2 = scmp.eq.s32.totalorder %s442_s18, 1  ;;  %p142_p3 = scmp.ne.s32.totalorder %s585_s13, %s581_s12 }
   0x8   : > { %s757_s20 = smov (%p33_p0, %s31_s20), 0  ;;  %p143_p5 = scmp.eq.s32.totalorder %s443_s19, 1 }
   0x9   : > { %p667_p4 = por %p137_p2, %p136_p1  ;;  %s119_s23 = ssub.s32 %s597_s16, %s757_s20 }
   0xa   : > { %p448_p6 = scmp.ge.s32.totalorder %s601_s17, 1  ;;  %p124_p7 = scmp.eq.s32.totalorder %s119_s23, 0 }
   0xb   : > { %p674_p8 = por %p143_p5, %p142_p3  ;;  %p185_p9 = scmp.lt.s32.totalorder %s601_s17, 3 }
   0xc   : > { %s680_s25 = scalar_select %p124_p7, %s589_s14, %s126_s21  }
   0xd   : > { %p186_p10 = pnand %p448_p6, %p185_p9 }
   0xe   : > { %p219_p11 = scmp.lt.s32.totalorder (!%p186_p10), %s593_s15, 1  ;;  %v603_v0 = vmov (!%p186_p10), 0.0   ;;  %vm604_vm0 = vmmov (!%p186_p10), 0   ;;  %v235_v1 = vld [vmem:[%s747_s2] sm:$0xff] (!%p186_p10)  ;;  %v605_v2 = vmov (!%p186_p10), 0   ;;  %vm246_vm1 = vcmask (!%p186_p10), 1043456  }
   0xf   : > { %189 = sbr.rel (%p186_p10) target bundleno = 256 (0x100), region = 32  ;;  %459 = vmatprep.subr.mxu0 (!%p186_p10), %v603_v0  ;;  %461 = vmatprep.mubr.msk.f32.mxu0 (!%p186_p10), %vm604_vm0, %v603_v0  ;;  %v234_v3 = vld [vmem:[%s746_s1] sm:$0xff] (!%p186_p10)  ;;  %vm242_vm2 = vcmask (!%p186_p10), 31744   ;;  %s216_s8 = sand.u32 (!%p186_p10), 1, %s585_s13  }
  0x10   : > { %522 = vset.pattern.permute.xlu0 (!%p186_p10), %v605_v2  ;;  %s449_s9 = sshll.u32 (!%p186_p10), %s216_s8, 3  ;;  %s454_s10 = sshll.u32 (!%p186_p10), %s593_s15, 7 }
  0x11   : > { %238 = vperm.xlu0 (!%p186_p10), %522, %v235_v1   ;;  %s218_s11 = scalar_lea.vmem (!%p186_p10), [#allocation2], %s449_s9  ;;  %s698_s23 = scalar_lea.hbm (!%p186_p10), %s748_s3, %s454_s10 }
  0x12   : > { %s337_s18 = sshll.u32 (!%p186_p10), %s218_s11, 4  ;;  %s322_s26 = scalar_lea.sflag (!%p186_p10), [#allocation3], %s216_s8  ;;  %s700_s18 = int_to_ptr.vmem [resolvable:$true] %s337_s18 }
  0x13   : > { %s523_s27 = scalar_lea.vmem (!%p186_p10), %s700_s18, 128 }
  0x14   : > { %p524_p12 = scmp.ne.s32.totalorder (!%p186_p10), %s700_s18, %s523_s27 }
  0x16   : > { %s220_s28 = scalar_select %p219_p11, %s593_s15, 1 }
  0x17   : > { %p525_p13 = pnand %p524_p12, %p667_p4  ;;  %s606_s15 = smov [#allocation2]  }
  0x18   : > { %s450_s29 = sshll.u32 %s220_s28, 2  ;;  %s527_s28 = sshll.u32 %s606_s15, 4  ;;  %s528_s28 = int_to_ptr.vmem [resolvable:$false] %s527_s28 }
  0x19   : > { %s225_s5 = scalar_lea.vmem %s745_s0, %s450_s29  ;;  %p526_p0 = pneg %p525_p13 }
  0x1a   : > { %v241_v4 = vld [vmem:[%s225_s5] sm:$0xf]  ;;  %s529_s29 = scalar_lea.vmem %s528_s28, 256  ;;  %p530_p1 = scmp.lt.s32.totalorder %s700_s18, %s528_s28 }
  0x1b   : > { %460 = vmatpush3.msk.msra.mxu0 %vm246_vm1, %v241_v4  ;;  %p531_p2 = scmp.lt.s32.totalorder %s529_s29, %s523_s27 }
  0x1c   : > { %462 = vmatmul.mubr.msk.f32.vlgmr.msra.gmra.mrb[0].mxu0 %vm242_vm2, %v234_v3 }
  0x1d   : > { %p532_p3 = por %p531_p2, %p530_p1 }
  0x1f   : > { %p533_p5 = pnand %p532_p3, %p526_p0 }
  0x90   : > { %v239_v5 = vpop.permute.xlu0 %238 }
  0xef   : > { %v316_v6 = vpop.f32.mrb[0].mxu0 }
  0xf0   : > { %v317_v7 = vadd.f32 %v316_v6, %v239_v5  ;;  %v463_v8 = vpop.f32.mrb[1].mxu0 }
  0xf2   : > { %320 = vst [vmem:[%s218_s11] sm:$0xff] %v317_v7 }
  0xf3   : > { %536 = shalt.err (!%p533_p5)
}
  0xf4   : > { %s537_s30 = scalar_lea.hbm %s698_s23, 128  ;;  %s541_s6 = scalar_lea.hbm %s748_s3, 256 }
  0xf5   : > { %p538_p6 = scmp.ne.s32.totalorder %s698_s23, %s537_s30  ;;  %p542_p10 = scmp.lt.u32.totalorder %s698_s23, %s748_s3 }
  0xf6   : > { %p543_p11 = scmp.lt.u32.totalorder %s541_s6, %s537_s30  ;;  %p545_p13 = scmp.lt.u32.totalorder %s537_s30, %s698_s23 }
  0xf7   : > { %p539_p7 = pnand %p538_p6, %p667_p4 }
  0xf8   : > { %p544_p12 = por %p543_p11, %p542_p10 }
  0xf9   : > { %p540_p9 = pneg %p539_p7 }
  0xfa   : > { %p546_p0 = por %p545_p13, %p544_p12 }
  0xfc   : > { %p547_p1 = pnand %p546_p0, %p540_p9 }
  0xfe   : > { %550 = shalt.err (!%p547_p1)
}
  0xff   : > { %464 = dma.vmem_to_hbm [thread:$0]  (%p667_p4), %s700_s18, 128, %s698_s23, %s322_s26  }
 0x100 PF: > { %p470_p2 = scmp.ge.s32.totalorder %s601_s17, 2  ;;  %s349_s9 = sand.u32 1, %s581_s12  }
 0x101   : > { %s350_s10 = scalar_lea.sflag [#allocation3], %s349_s9 }
 0x102   : > { %p467_p3 = pnand %p470_p2, %p674_p8 }
 0x104   : > { %576 = dma.done.wait (!%p467_p3), %s350_s10, 128  }
 0x105   : > { %578 = vsyncadd (!%p467_p3), %s350_s10, 4294967168  ;;  %s16_s17 = sadd.s32 1, %s601_s17   ;;  %s751_s12 = smov %s585_s13 }
 0x106   : > { %p13_p5 = scmp.ge.s32.totalorder %s16_s17, 4   ;;  %s752_s13 = smov %s589_s14 }
 0x107   : > { %s753_s14 = smov %s680_s25  ;;  %s754_s15 = smov %s597_s16 }
 0x108   : > { %s755_s16 = smov %s757_s20  ;;  %15 = sbr.rel (!%p13_p5) target bundleno = 4 (0x4), region = 73 }
 0x10f   :  { %355 = vsyncpa [#allocation3], 1 }
 0x110   :  { %357 = vsyncpa [#allocation3 + $0x1], 1 }

// kernel: tpu_custom_call.1
= control target key start
LH: loop header
LB: loop body
LE: loop exit
PB: predicated region body
PF: predicated region fallthrough
CT: control target
= control target key end

     0   :  { %8 = vsyncpa [#allocation3], 0  ;;  %s745_s0 = inlined_call_operand.vmem [shape: f32[2,4,128], index: 0, kind: input, shape index: {}]   ;;  %s746_s1 = inlined_call_operand.vmem [shape: f32[8,4], index: 1, kind: input, shape index: {}]   ;;  %s747_s2 = inlined_call_operand.vmem [shape: f32[8,1], index: 2, kind: input, shape index: {}]   ;;  %s748_s3 = inlined_call_operand.hbm [shape: f32[2,8,128], index: 3, kind: output, shape index: {}]  }
   0x1   :  { %10 = vsyncpa [#allocation3 + $0x1], 0  ;;  %s627_s12 = smov 0   ;;  %s629_s13 = smov 0  }
   0x2   :  { %s631_s14 = smov 0   ;;  %s633_s15 = smov 0  }
   0x3   :  { %s635_s16 = smov 0   ;;  %s637_s17 = smov 0  }
   0x4 LB: > { %s442_s18 = sadd.s32 4294967295, %s601_s17   ;;  %s443_s19 = sadd.s32 4294967294, %s601_s17   ;;  %s601_s17 = sphi %s637_s17, %s16_s17   ;;  %s597_s16 = sphi %s635_s16, %s755_s16   ;;  %s593_s15 = sphi %s633_s15, %s754_s15   ;;  %s589_s14 = sphi %s631_s14, %s753_s14   ;;  %s585_s13 = sphi %s629_s13, %s752_s13   ;;  %s581_s12 = sphi %s627_s12, %s751_s12  }
   0x5   : > { %s31_s20 = sadd.s32 1, %s597_s16  ;;  %s126_s21 = sadd.s32 1, %s589_s14 }
   0x6   : > { %p33_p0 = scmp.ge.s32.totalorder %s31_s20, 2  ;;  %p136_p1 = scmp.ne.s32.totalorder %s589_s14, %s585_s13 }
   0x7   : > { %p137_p2 = scmp.eq.s32.totalorder %s442_s18, 1  ;;  %p142_p3 = scmp.ne.s32.totalorder %s585_s13, %s581_s12 }
   0x8   : > { %s757_s20 = smov (%p33_p0, %s31_s20), 0  ;;  %p143_p5 = scmp.eq.s32.totalorder %s443_s19, 1 }
   0x9   : > { %p667_p4 = por %p137_p2, %p136_p1  ;;  %s119_s23 = ssub.s32 %s597_s16, %s757_s20 }
   0xa   : > { %p448_p6 = scmp.ge.s32.totalorder %s601_s17, 1  ;;  %p124_p7 = scmp.eq.s32.totalorder %s119_s23, 0 }
   0xb   : > { %p674_p8 = por %p143_p5, %p142_p3  ;;  %p185_p9 = scmp.lt.s32.totalorder %s601_s17, 3 }
   0xc   : > { %s680_s25 = scalar_select %p124_p7, %s589_s14, %s126_s21  }
   0xd   : > { %p186_p10 = pnand %p448_p6, %p185_p9 }
   0xe   : > { %p219_p11 = scmp.lt.s32.totalorder (!%p186_p10), %s593_s15, 1  ;;  %v603_v0 = vmov (!%p186_p10), 0.0   ;;  %vm604_vm0 = vmmov (!%p186_p10), 0   ;;  %v235_v1 = vld [vmem:[%s747_s2] sm:$0xff] (!%p186_p10)  ;;  %v605_v2 = vmov (!%p186_p10), 0   ;;  %vm246_vm1 = vcmask (!%p186_p10), 1043456  }
   0xf   : > { %189 = sbr.rel (%p186_p10) target bundleno = 256 (0x100), region = 32  ;;  %459 = vmatprep.subr.mxu0 (!%p186_p10), %v603_v0  ;;  %461 = vmatprep.mubr.msk.f32.mxu0 (!%p186_p10), %vm604_vm0, %v603_v0  ;;  %v234_v3 = vld [vmem:[%s746_s1] sm:$0xff] (!%p186_p10)  ;;  %vm242_vm2 = vcmask (!%p186_p10), 31744   ;;  %s216_s8 = sand.u32 (!%p186_p10), 1, %s585_s13  }
  0x10   : > { %522 = vset.pattern.permute.xlu0 (!%p186_p10), %v605_v2  ;;  %s449_s9 = sshll.u32 (!%p186_p10), %s216_s8, 3  ;;  %s454_s10 = sshll.u32 (!%p186_p10), %s593_s15, 7 }
  0x11   : > { %238 = vperm.xlu0 (!%p186_p10), %522, %v235_v1   ;;  %s218_s11 = scalar_lea.vmem (!%p186_p10), [#allocation2], %s449_s9  ;;  %s698_s23 = scalar_lea.hbm (!%p186_p10), %s748_s3, %s454_s10 }
  0x12   : > { %s337_s18 = sshll.u32 (!%p186_p10), %s218_s11, 4  ;;  %s322_s26 = scalar_lea.sflag (!%p186_p10), [#allocation3], %s216_s8  ;;  %s700_s18 = int_to_ptr.vmem [resolvable:$true] %s337_s18 }
  0x13   : > { %s523_s27 = scalar_lea.vmem (!%p186_p10), %s700_s18, 128 }
  0x14   : > { %p524_p12 = scmp.ne.s32.totalorder (!%p186_p10), %s700_s18, %s523_s27 }
  0x16   : > { %s220_s28 = scalar_select %p219_p11, %s593_s15, 1 }
  0x17   : > { %p525_p13 = pnand %p524_p12, %p667_p4  ;;  %s606_s15 = smov [#allocation2]  }
  0x18   : > { %s450_s29 = sshll.u32 %s220_s28, 2  ;;  %s527_s28 = sshll.u32 %s606_s15, 4  ;;  %s528_s28 = int_to_ptr.vmem [resolvable:$false] %s527_s28 }
  0x19   : > { %s225_s5 = scalar_lea.vmem %s745_s0, %s450_s29  ;;  %p526_p0 = pneg %p525_p13 }
  0x1a   : > { %v241_v4 = vld [vmem:[%s225_s5] sm:$0xf]  ;;  %s529_s29 = scalar_lea.vmem %s528_s28, 256  ;;  %p530_p1 = scmp.lt.s32.totalorder %s700_s18, %s528_s28 }
  0x1b   : > { %460 = vmatpush3.msk.msra.mxu0 %vm246_vm1, %v241_v4  ;;  %p531_p2 = scmp.lt.s32.totalorder %s529_s29, %s523_s27 }
  0x1c   : > { %462 = vmatmul.mubr.msk.f32.vlgmr.msra.gmra.mrb[0].mxu0 %vm242_vm2, %v234_v3 }
  0x1d   : > { %p532_p3 = por %p531_p2, %p530_p1 }
  0x1f   : > { %p533_p5 = pnand %p532_p3, %p526_p0 }
  0x90   : > { %v239_v5 = vpop.permute.xlu0 %238 }
  0xef   : > { %v316_v6 = vpop.f32.mrb[0].mxu0 }
  0xf0   : > { %v317_v7 = vadd.f32 %v316_v6, %v239_v5  ;;  %v463_v8 = vpop.f32.mrb[1].mxu0 }
  0xf2   : > { %320 = vst [vmem:[%s218_s11] sm:$0xff] %v317_v7 }
  0xf3   : > { %536 = shalt.err (!%p533_p5)
}
  0xf4   : > { %s537_s30 = scalar_lea.hbm %s698_s23, 128  ;;  %s541_s6 = scalar_lea.hbm %s748_s3, 256 }
  0xf5   : > { %p538_p6 = scmp.ne.s32.totalorder %s698_s23, %s537_s30  ;;  %p542_p10 = scmp.lt.u32.totalorder %s698_s23, %s748_s3 }
  0xf6   : > { %p543_p11 = scmp.lt.u32.totalorder %s541_s6, %s537_s30  ;;  %p545_p13 = scmp.lt.u32.totalorder %s537_s30, %s698_s23 }
  0xf7   : > { %p539_p7 = pnand %p538_p6, %p667_p4 }
  0xf8   : > { %p544_p12 = por %p543_p11, %p542_p10 }
  0xf9   : > { %p540_p9 = pneg %p539_p7 }
  0xfa   : > { %p546_p0 = por %p545_p13, %p544_p12 }
  0xfc   : > { %p547_p1 = pnand %p546_p0, %p540_p9 }
  0xfe   : > { %550 = shalt.err (!%p547_p1)
}
  0xff   : > { %464 = dma.vmem_to_hbm [thread:$0]  (%p667_p4), %s700_s18, 128, %s698_s23, %s322_s26  }
 0x100 PF: > { %p470_p2 = scmp.ge.s32.totalorder %s601_s17, 2  ;;  %s349_s9 = sand.u32 1, %s581_s12  }
 0x101   : > { %s350_s10 = scalar_lea.sflag [#allocation3], %s349_s9 }
 0x102   : > { %p467_p3 = pnand %p470_p2, %p674_p8 }
 0x104   : > { %576 = dma.done.wait (!%p467_p3), %s350_s10, 128  }
 0x105   : > { %578 = vsyncadd (!%p467_p3), %s350_s10, 4294967168  ;;  %s16_s17 = sadd.s32 1, %s601_s17   ;;  %s751_s12 = smov %s585_s13 }
 0x106   : > { %p13_p5 = scmp.ge.s32.totalorder %s16_s17, 4   ;;  %s752_s13 = smov %s589_s14 }
 0x107   : > { %s753_s14 = smov %s680_s25  ;;  %s754_s15 = smov %s597_s16 }
 0x108   : > { %s755_s16 = smov %s757_s20  ;;  %15 = sbr.rel (!%p13_p5) target bundleno = 4 (0x4), region = 73 }
 0x10f   :  { %355 = vsyncpa [#allocation3], 1 }
 0x110   :  { %357 = vsyncpa [#allocation3 + $0x1], 1 }

</bundles_post_ra>
